<compile_context>
chip_gen: v5e
topology: v5e:2x2
jax: 0.10.0
libtpu: 0.0.40
codegen_flags: <defaults>
</compile_context>

<pallas_src>
import functools

import jax
import jax.numpy as jnp
from jax.experimental import pallas as pl
from jax.experimental.pallas import tpu as pltpu

LANE = 128
SUBLANE = 8


def _round_up(v, m):
    return ((v + m - 1) // m) * m


# ---------------------------------------------------------------------------
# Kernel: grid = (2 layers, N_pad // tm row tiles), layer-major iteration.
#   layer 0:  h[tile]   = relu(A_cat[tile] @ stack_r(X @ W1_r) + b1_sum)
#   layer 1:  out[tile] =      A_cat[tile] @ stack_r(H @ W2_r) + b2_sum
# The stacked feature transforms depend on ALL source nodes, so they are
# computed once per layer (t == 0) into VMEM scratch and reused by every tile.
# ---------------------------------------------------------------------------
def _rgcn_kernel(a_ref, x_ref, w1_ref, b1_ref, w2_ref, b2_ref, o_ref,
                 xw1_ref, h_ref, xw2_ref, *, num_rel, n_pad, tm):
    layer = pl.program_id(0)
    t = pl.program_id(1)

    @pl.when(layer == 0)
    def _layer1():
        @pl.when(t == 0)
        def _():
            x = x_ref[...]
            for r in range(num_rel):                       # static unroll over R
                xw1_ref[r * n_pad:(r + 1) * n_pad, :] = jnp.dot(
                    x, w1_ref[r], preferred_element_type=jnp.float32)
        # Single K-concatenated aggregation matmul over all relations.
        h_tile = jnp.dot(a_ref[...], xw1_ref[...],
                         preferred_element_type=jnp.float32)
        row0 = pl.multiple_of(t * tm, tm)
        h_ref[pl.ds(row0, tm), :] = jnp.maximum(h_tile + b1_ref[...], 0.0)

    @pl.when(layer == 1)
    def _layer2():
        @pl.when(t == 0)
        def _():
            h = h_ref[...]
            for r in range(num_rel):
                xw2_ref[r * n_pad:(r + 1) * n_pad, :] = jnp.dot(
                    h, w2_ref[r], preferred_element_type=jnp.float32)
        out_tile = jnp.dot(a_ref[...], xw2_ref[...],
                           preferred_element_type=jnp.float32)
        o_ref[...] = (out_tile + b2_ref[...]).astype(o_ref.dtype)


# ---------------------------------------------------------------------------
# One-time setup (hoisted out of the per-forward path).
# ---------------------------------------------------------------------------
def normalize_adj_both(adj):
    """DGL GraphConv norm='both': A_hat = D_dst^{-1/2} A D_src^{-1/2}."""
    in_deg = jnp.clip(adj.sum(axis=2), 1.0, None)   # [R, N_dst]
    out_deg = jnp.clip(adj.sum(axis=1), 1.0, None)  # [R, N_src]
    return adj * (1.0 / jnp.sqrt(in_deg))[:, :, None] * (1.0 / jnp.sqrt(out_deg))[:, None, :]


def prepare_rgcn(adj, params, *, tm=None):
    """Normalize + K-concatenate the adjacency, pad/stack weights, sum biases."""
    R, N, _ = adj.shape
    f_in, hid = params["w1"].shape[1], params["w1"].shape[2]
    out = params["w2"].shape[2]

    hid_p = _round_up(max(hid, LANE), LANE)
    out_p = _round_up(max(out, LANE), LANE)

    if tm is None:
        tm = 256 if N >= 256 else _round_up(N, SUBLANE)   # MXU-height rows per tile
    tm = _round_up(tm, SUBLANE)
    n_pad = _round_up(N, tm)

    a_norm = normalize_adj_both(adj)
    a_pad = jnp.pad(a_norm, ((0, 0), (0, n_pad - N), (0, n_pad - N)))
    # [N_dst, R * N_src]: column block r holds relation r (K-concatenation).
    a_cat = jnp.transpose(a_pad, (1, 0, 2)).reshape(n_pad, R * n_pad)

    w1_p = jnp.pad(params["w1"], ((0, 0), (0, 0), (0, hid_p - hid)))
    w2_p = jnp.pad(params["w2"], ((0, 0), (0, hid_p - hid), (0, out_p - out)))
    # Biases are relation-independent after HeteroGraphConv 'sum' aggregation.
    b1_sum = jnp.pad(params["b1"].sum(axis=0), ((0, 0), (0, hid_p - hid)))
    b2_sum = jnp.pad(params["b2"].sum(axis=0), ((0, 0), (0, out_p - out)))

    # TODO(synk): optionally cast a_cat / x / weights to bfloat16 here (f32
    # accumulation kept in-kernel) to halve HBM traffic; needs ~2e-2 tolerance.

    return dict(a_cat=a_cat, w1=w1_p, b1=b1_sum, w2=w2_p, b2=b2_sum,
                dims=dict(R=R, N=N, n_pad=n_pad, tm=tm, f_in=f_in,
                          hid=hid, hid_p=hid_p, out=out, out_p=out_p))


# ---------------------------------------------------------------------------
# Forward: one pallas_call, two-phase grid.
# ---------------------------------------------------------------------------
def rgcn_forward(prep, x):
    d = prep["dims"]
    R, N, n_pad, tm = d["R"], d["N"], d["n_pad"], d["tm"]
    f_in, hid_p, out, out_p = d["f_in"], d["hid_p"], d["out"], d["out_p"]
    n_tiles = n_pad // tm

    x_pad = jnp.pad(x, ((0, n_pad - N), (0, 0)))

    kernel = functools.partial(_rgcn_kernel, num_rel=R, n_pad=n_pad, tm=tm)

    # Working-set estimate (f32) -> scoped VMEM limit (covers v5e's 16 MiB
    # default; clamp well under physical VMEM).
    vmem_bytes = 4 * (
        2 * tm * R * n_pad            # A tile, double-buffered
        + n_pad * f_in                # x
        + R * f_in * hid_p + hid_p    # W1, b1
        + R * hid_p * out_p + out_p   # W2, b2
        + R * n_pad * hid_p           # stacked X @ W1_r scratch
        + n_pad * hid_p               # persistent h scratch
        + R * n_pad * out_p           # stacked H @ W2_r scratch
        + 2 * tm * out_p)             # out tile, double-buffered
    vmem_limit = int(min(max(vmem_bytes * 5 // 4, 32 << 20), 100 << 20))
    # TODO(synk): on v7x (64 MiB physical VMEM) cap the limit at ~56 MiB and
    # shrink tm when the working set above exceeds it.

    flops = (2 * n_pad * R * (f_in * hid_p + hid_p * out_p)       # feature transforms
             + 2 * n_pad * (R * n_pad) * (hid_p + out_p))         # aggregation matmuls
    bytes_accessed = 4 * (2 * n_pad * R * n_pad + n_pad * f_in
                          + R * f_in * hid_p + R * hid_p * out_p + n_pad * out_p)

    inv = pl.Buffered(1)   # grid-invariant operands: no dead second buffer

    out_padded = pl.pallas_call(
        kernel,
        out_shape=jax.ShapeDtypeStruct((n_pad, out_p), jnp.float32),
        grid=(2, n_tiles),
        in_specs=[
            pl.BlockSpec((tm, R * n_pad), lambda l, t: (t, 0)),               # A_cat row tile
            pl.BlockSpec((n_pad, f_in), lambda l, t: (0, 0), pipeline_mode=inv),
            pl.BlockSpec((R, f_in, hid_p), lambda l, t: (0, 0, 0), pipeline_mode=inv),
            pl.BlockSpec((1, hid_p), lambda l, t: (0, 0), pipeline_mode=inv),
            pl.BlockSpec((R, hid_p, out_p), lambda l, t: (0, 0, 0), pipeline_mode=inv),
            pl.BlockSpec((1, out_p), lambda l, t: (0, 0), pipeline_mode=inv),
        ],
        # Layer 0 keeps the output block index at 0 (no writeback of untouched
        # tiles); layer 1 writes/flushes tile t exactly once.
        out_specs=pl.BlockSpec((tm, out_p), lambda l, t: (l * t, 0)),
        scratch_shapes=[
            pltpu.VMEM((R * n_pad, hid_p), jnp.float32),   # stacked X @ W1_r
            pltpu.VMEM((n_pad, hid_p), jnp.float32),       # h (persists across layer axis)
            pltpu.VMEM((R * n_pad, out_p), jnp.float32),   # stacked H @ W2_r
        ],
        compiler_params=pltpu.CompilerParams(
            # Layer-2 row tiles read h produced by ALL layer-1 row tiles via the
            # shared VMEM scratch, so both axes must stay sequential here.
            # TODO(synk): for v7x megacore, split into two pallas_calls with a
            # "parallel" row axis (h round-trips HBM) once N is large enough.
            dimension_semantics=("arbitrary", "arbitrary"),
            vmem_limit_bytes=vmem_limit),
        cost_estimate=pl.CostEstimate(flops=int(flops), transcendentals=0,
                                      bytes_accessed=int(bytes_accessed)),
    )(prep["a_cat"], x_pad, prep["w1"], prep["b1"], prep["w2"], prep["b2"])

    return out_padded[:N, :out]


# ---------------------------------------------------------------------------
# Pure-JAX reference (for the correctness check).
# ---------------------------------------------------------------------------
def reference_forward(a_norm, x, params):
    h = jnp.einsum("rds,sf,rfo->do", a_norm, x, params["w1"]) + params["b1"][:, 0].sum(0)
    h = jnp.maximum(h, 0.0)
    out = jnp.einsum("rds,sf,rfo->do", a_norm, h, params["w2"]) + params["b2"][:, 0].sum(0)
    return out


if __name__ == "__main__":
    # Small, TPU-friendly shapes (single node type shared by all relations).
    N = 44          # number of nodes (deliberately not a tile multiple)
    R = 3           # number of relations (rel_names)
    in_feats = 16
    hid_feats = 32
    out_feats = 8

    key = jax.random.PRNGKey(0)
    k_adj, k_x, k_w1, k_b1, k_w2, k_b2 = jax.random.split(key, 6)

    # Deterministic sparse-ish adjacency per relation; self-loops avoid
    # zero-degree nodes (DGL would otherwise need allow_zero_in_degree).
    adj = (jax.random.uniform(k_adj, (R, N, N)) < 0.15).astype(jnp.float32)
    adj = jnp.maximum(adj, jnp.eye(N, dtype=jnp.float32)[None])

    x = jax.random.normal(k_x, (N, in_feats), dtype=jnp.float32)

    params = {
        "w1": jax.random.normal(k_w1, (R, in_feats, hid_feats), dtype=jnp.float32) * 0.1,
        "b1": jax.random.normal(k_b1, (R, 1, hid_feats), dtype=jnp.float32) * 0.1,
        "w2": jax.random.normal(k_w2, (R, hid_feats, out_feats), dtype=jnp.float32) * 0.1,
        "b2": jax.random.normal(k_b2, (R, 1, out_feats), dtype=jnp.float32) * 0.1,
    }

    # One-time prep (small tm to exercise multiple row tiles; use tm>=256 at
    # realistic N).
    prep = prepare_rgcn(adj, params, tm=16)

    out = rgcn_forward(prep, x)
    out = jax.block_until_ready(out)

    ref = reference_forward(normalize_adj_both(adj), x, params)
    assert out.shape == (N, out_feats)
    assert jnp.allclose(out, ref, atol=1e-4, rtol=1e-4), "Pallas output mismatch vs reference"

    print("KERNEL_OK")
</pallas_src>

<mosaic_0001>
module attributes {stable_mosaic.version = 11 : i64} {
  func.func @_rgcn_kernel(%arg0: i32, %arg1: i32, %arg2: memref<16x144xf32, #tpu.memory_space<vmem>>, %arg3: memref<48x16xf32, #tpu.memory_space<vmem>>, %arg4: memref<3x16x128xf32, #tpu.memory_space<vmem>>, %arg5: memref<1x128xf32, #tpu.memory_space<vmem>>, %arg6: memref<3x128x128xf32, #tpu.memory_space<vmem>>, %arg7: memref<1x128xf32, #tpu.memory_space<vmem>>, %arg8: memref<16x128xf32, #tpu.memory_space<vmem>>, %arg9: memref<144x128xf32, #tpu.memory_space<vmem>>, %arg10: memref<48x128xf32, #tpu.memory_space<vmem>>, %arg11: memref<144x128xf32, #tpu.memory_space<vmem>>) attributes {dimension_semantics = [#tpu.dimension_semantics<arbitrary>, #tpu.dimension_semantics<arbitrary>], iteration_bounds = array<i64: 2, 3>, scalar_prefetch = 0 : i64, scratch_operands = 3 : i64, tpu.core_type = #tpu.core_type<tc>, window_params = [{transform_indices = @transform_0, window_bounds = array<i64: 16, 144>}, {pipeline_mode = #tpu.pipeline_mode<synchronous>, transform_indices = @transform_1, window_bounds = array<i64: 48, 16>}, {pipeline_mode = #tpu.pipeline_mode<synchronous>, transform_indices = @transform_2, window_bounds = array<i64: 3, 16, 128>}, {pipeline_mode = #tpu.pipeline_mode<synchronous>, transform_indices = @transform_3, window_bounds = array<i64: 1, 128>}, {pipeline_mode = #tpu.pipeline_mode<synchronous>, transform_indices = @transform_4, window_bounds = array<i64: 3, 128, 128>}, {pipeline_mode = #tpu.pipeline_mode<synchronous>, transform_indices = @transform_5, window_bounds = array<i64: 1, 128>}, {transform_indices = @transform_6, window_bounds = array<i64: 16, 128>}]} {
    %c0_i32 = arith.constant 0 : i32
    %0 = arith.cmpi eq, %arg0, %c0_i32 : i32
    %1 = arith.extui %0 : i1 to i32
    %c0_i32_0 = arith.constant 0 : i32
    %2 = arith.cmpi ne, %1, %c0_i32_0 : i32
    scf.if %2 {
      %c0_i32_2 = arith.constant 0 : i32
      %6 = arith.cmpi eq, %arg1, %c0_i32_2 : i32
      %7 = arith.extui %6 : i1 to i32
      %c0_i32_3 = arith.constant 0 : i32
      %8 = arith.cmpi ne, %7, %c0_i32_3 : i32
      scf.if %8 {
        %c0_11 = arith.constant 0 : index
        %c0_12 = arith.constant 0 : index
        %21 = vector.load %arg3[%c0_11, %c0_12] : memref<48x16xf32, #tpu.memory_space<vmem>>, vector<48x16xf32>
        %c0_13 = arith.constant 0 : index
        %c0_14 = arith.constant 0 : index
        %c0_15 = arith.constant 0 : index
        %22 = vector.load %arg4[%c0_13, %c0_14, %c0_15] : memref<3x16x128xf32, #tpu.memory_space<vmem>>, vector<1x16x128xf32>
        %23 = vector.shape_cast %22 : vector<1x16x128xf32> to vector<16x128xf32>
        %cst_16 = arith.constant dense<0.000000e+00> : vector<48x128xf32>
        %24 = tpu.matmul %21, %23, %cst_16 {dimension_numbers = #tpu.dot_dimension_numbers<[1], [0], [0], [1], [0, 0, 1, 1], [], []>} : vector<48x16xf32>, vector<16x128xf32>, vector<48x128xf32> -> vector<48x128xf32>
        %c0_17 = arith.constant 0 : index
        %c0_18 = arith.constant 0 : index
        %25 = vector.load %arg9[%c0_17, %c0_18] : memref<144x128xf32, #tpu.memory_space<vmem>>, vector<48x128xf32>
        tpu.vector_store %arg9[%c0_17, %c0_18], %24 {strides = array<i32>} : memref<144x128xf32, #tpu.memory_space<vmem>>, vector<48x128xf32>,
        %c1 = arith.constant 1 : index
        %c0_19 = arith.constant 0 : index
        %c0_20 = arith.constant 0 : index
        %26 = vector.load %arg4[%c1, %c0_19, %c0_20] : memref<3x16x128xf32, #tpu.memory_space<vmem>>, vector<1x16x128xf32>
        %27 = vector.shape_cast %26 : vector<1x16x128xf32> to vector<16x128xf32>
        %cst_21 = arith.constant dense<0.000000e+00> : vector<48x128xf32>
        %28 = tpu.matmul %21, %27, %cst_21 {dimension_numbers = #tpu.dot_dimension_numbers<[1], [0], [0], [1], [0, 0, 1, 1], [], []>} : vector<48x16xf32>, vector<16x128xf32>, vector<48x128xf32> -> vector<48x128xf32>
        %c48 = arith.constant 48 : index
        %c0_22 = arith.constant 0 : index
        %29 = vector.load %arg9[%c48, %c0_22] : memref<144x128xf32, #tpu.memory_space<vmem>>, vector<48x128xf32>
        tpu.vector_store %arg9[%c48, %c0_22], %28 {strides = array<i32>} : memref<144x128xf32, #tpu.memory_space<vmem>>, vector<48x128xf32>,
        %c2 = arith.constant 2 : index
        %c0_23 = arith.constant 0 : index
        %c0_24 = arith.constant 0 : index
        %30 = vector.load %arg4[%c2, %c0_23, %c0_24] : memref<3x16x128xf32, #tpu.memory_space<vmem>>, vector<1x16x128xf32>
        %31 = vector.shape_cast %30 : vector<1x16x128xf32> to vector<16x128xf32>
        %cst_25 = arith.constant dense<0.000000e+00> : vector<48x128xf32>
        %32 = tpu.matmul %21, %31, %cst_25 {dimension_numbers = #tpu.dot_dimension_numbers<[1], [0], [0], [1], [0, 0, 1, 1], [], []>} : vector<48x16xf32>, vector<16x128xf32>, vector<48x128xf32> -> vector<48x128xf32>
        %c96 = arith.constant 96 : index
        %c0_26 = arith.constant 0 : index
        %33 = vector.load %arg9[%c96, %c0_26] : memref<144x128xf32, #tpu.memory_space<vmem>>, vector<48x128xf32>
        tpu.vector_store %arg9[%c96, %c0_26], %32 {strides = array<i32>} : memref<144x128xf32, #tpu.memory_space<vmem>>, vector<48x128xf32>,
      } else {
      }
      %c0 = arith.constant 0 : index
      %c0_4 = arith.constant 0 : index
      %9 = vector.load %arg2[%c0, %c0_4] : memref<16x144xf32, #tpu.memory_space<vmem>>, vector<16x144xf32>
      %c0_5 = arith.constant 0 : index
      %c0_6 = arith.constant 0 : index
      %10 = vector.load %arg9[%c0_5, %c0_6] : memref<144x128xf32, #tpu.memory_space<vmem>>, vector<144x128xf32>
      %cst = arith.constant dense<0.000000e+00> : vector<16x128xf32>
      %11 = tpu.matmul %9, %10, %cst {dimension_numbers = #tpu.dot_dimension_numbers<[1], [0], [0], [1], [0, 0, 1, 1], [], []>} : vector<16x144xf32>, vector<144x128xf32>, vector<16x128xf32> -> vector<16x128xf32>
      %c16_i32 = arith.constant 16 : i32
      %12 = arith.muli %arg1, %c16_i32 : i32
      %13 = tpu.assume_multiple %12, 16 : i32
      %c0_7 = arith.constant 0 : index
      %c0_8 = arith.constant 0 : index
      %14 = vector.load %arg5[%c0_7, %c0_8] : memref<1x128xf32, #tpu.memory_space<vmem>>, vector<1x128xf32>
      %15 = vector.broadcast %14 : vector<1x128xf32> to vector<16x128xf32>
      %16 = arith.addf %11, %15 : vector<16x128xf32>
      %cst_9 = arith.constant 0.000000e+00 : f32
      %17 = vector.broadcast %cst_9 : f32 to vector<16x128xf32>
      %18 = arith.maximumf %16, %17 : vector<16x128xf32>
      %19 = arith.index_cast %13 : i32 to index
      %c0_10 = arith.constant 0 : index
      %20 = vector.load %arg10[%19, %c0_10] : memref<48x128xf32, #tpu.memory_space<vmem>>, vector<16x128xf32>
      tpu.vector_store %arg10[%19, %c0_10], %18 {strides = array<i32>} : memref<48x128xf32, #tpu.memory_space<vmem>>, vector<16x128xf32>,
    } else {
    }
    %c1_i32 = arith.constant 1 : i32
    %3 = arith.cmpi eq, %arg0, %c1_i32 : i32
    %4 = arith.extui %3 : i1 to i32
    %c0_i32_1 = arith.constant 0 : i32
    %5 = arith.cmpi ne, %4, %c0_i32_1 : i32
    scf.if %5 {
      %c0_i32_2 = arith.constant 0 : i32
      %6 = arith.cmpi eq, %arg1, %c0_i32_2 : i32
      %7 = arith.extui %6 : i1 to i32
      %c0_i32_3 = arith.constant 0 : i32
      %8 = arith.cmpi ne, %7, %c0_i32_3 : i32
      scf.if %8 {
        %c0_11 = arith.constant 0 : index
        %c0_12 = arith.constant 0 : index
        %16 = vector.load %arg10[%c0_11, %c0_12] : memref<48x128xf32, #tpu.memory_space<vmem>>, vector<48x128xf32>
        %c0_13 = arith.constant 0 : index
        %c0_14 = arith.constant 0 : index
        %c0_15 = arith.constant 0 : index
        %17 = vector.load %arg6[%c0_13, %c0_14, %c0_15] : memref<3x128x128xf32, #tpu.memory_space<vmem>>, vector<1x128x128xf32>
        %18 = vector.shape_cast %17 : vector<1x128x128xf32> to vector<128x128xf32>
        %cst_16 = arith.constant dense<0.000000e+00> : vector<48x128xf32>
        %19 = tpu.matmul %16, %18, %cst_16 {dimension_numbers = #tpu.dot_dimension_numbers<[1], [0], [0], [1], [0, 0, 1, 1], [], []>} : vector<48x128xf32>, vector<128x128xf32>, vector<48x128xf32> -> vector<48x128xf32>
        %c0_17 = arith.constant 0 : index
        %c0_18 = arith.constant 0 : index
        %20 = vector.load %arg11[%c0_17, %c0_18] : memref<144x128xf32, #tpu.memory_space<vmem>>, vector<48x128xf32>
        tpu.vector_store %arg11[%c0_17, %c0_18], %19 {strides = array<i32>} : memref<144x128xf32, #tpu.memory_space<vmem>>, vector<48x128xf32>,
        %c1 = arith.constant 1 : index
        %c0_19 = arith.constant 0 : index
        %c0_20 = arith.constant 0 : index
        %21 = vector.load %arg6[%c1, %c0_19, %c0_20] : memref<3x128x128xf32, #tpu.memory_space<vmem>>, vector<1x128x128xf32>
        %22 = vector.shape_cast %21 : vector<1x128x128xf32> to vector<128x128xf32>
        %cst_21 = arith.constant dense<0.000000e+00> : vector<48x128xf32>
        %23 = tpu.matmul %16, %22, %cst_21 {dimension_numbers = #tpu.dot_dimension_numbers<[1], [0], [0], [1], [0, 0, 1, 1], [], []>} : vector<48x128xf32>, vector<128x128xf32>, vector<48x128xf32> -> vector<48x128xf32>
        %c48 = arith.constant 48 : index
        %c0_22 = arith.constant 0 : index
        %24 = vector.load %arg11[%c48, %c0_22] : memref<144x128xf32, #tpu.memory_space<vmem>>, vector<48x128xf32>
        tpu.vector_store %arg11[%c48, %c0_22], %23 {strides = array<i32>} : memref<144x128xf32, #tpu.memory_space<vmem>>, vector<48x128xf32>,
        %c2 = arith.constant 2 : index
        %c0_23 = arith.constant 0 : index
        %c0_24 = arith.constant 0 : index
        %25 = vector.load %arg6[%c2, %c0_23, %c0_24] : memref<3x128x128xf32, #tpu.memory_space<vmem>>, vector<1x128x128xf32>
        %26 = vector.shape_cast %25 : vector<1x128x128xf32> to vector<128x128xf32>
        %cst_25 = arith.constant dense<0.000000e+00> : vector<48x128xf32>
        %27 = tpu.matmul %16, %26, %cst_25 {dimension_numbers = #tpu.dot_dimension_numbers<[1], [0], [0], [1], [0, 0, 1, 1], [], []>} : vector<48x128xf32>, vector<128x128xf32>, vector<48x128xf32> -> vector<48x128xf32>
        %c96 = arith.constant 96 : index
        %c0_26 = arith.constant 0 : index
        %28 = vector.load %arg11[%c96, %c0_26] : memref<144x128xf32, #tpu.memory_space<vmem>>, vector<48x128xf32>
        tpu.vector_store %arg11[%c96, %c0_26], %27 {strides = array<i32>} : memref<144x128xf32, #tpu.memory_space<vmem>>, vector<48x128xf32>,
      } else {
      }
      %c0 = arith.constant 0 : index
      %c0_4 = arith.constant 0 : index
      %9 = vector.load %arg2[%c0, %c0_4] : memref<16x144xf32, #tpu.memory_space<vmem>>, vector<16x144xf32>
      %c0_5 = arith.constant 0 : index
      %c0_6 = arith.constant 0 : index
      %10 = vector.load %arg11[%c0_5, %c0_6] : memref<144x128xf32, #tpu.memory_space<vmem>>, vector<144x128xf32>
      %cst = arith.constant dense<0.000000e+00> : vector<16x128xf32>
      %11 = tpu.matmul %9, %10, %cst {dimension_numbers = #tpu.dot_dimension_numbers<[1], [0], [0], [1], [0, 0, 1, 1], [], []>} : vector<16x144xf32>, vector<144x128xf32>, vector<16x128xf32> -> vector<16x128xf32>
      %c0_7 = arith.constant 0 : index
      %c0_8 = arith.constant 0 : index
      %12 = vector.load %arg7[%c0_7, %c0_8] : memref<1x128xf32, #tpu.memory_space<vmem>>, vector<1x128xf32>
      %13 = vector.broadcast %12 : vector<1x128xf32> to vector<16x128xf32>
      %14 = arith.addf %11, %13 : vector<16x128xf32>
      %c0_9 = arith.constant 0 : index
      %c0_10 = arith.constant 0 : index
      %15 = vector.load %arg8[%c0_9, %c0_10] : memref<16x128xf32, #tpu.memory_space<vmem>>, vector<16x128xf32>
      tpu.vector_store %arg8[%c0_9, %c0_10], %14 {strides = array<i32>} : memref<16x128xf32, #tpu.memory_space<vmem>>, vector<16x128xf32>,
    } else {
    }
    return
  }
  func.func @transform_0(%arg0: i32, %arg1: i32) -> (i32, i32) {
    %c0_i32 = arith.constant 0 : i32
    %c0_i32_0 = arith.constant 0 : i32
    return %arg1, %c0_i32 : i32, i32
  }
  func.func @transform_1(%arg0: i32, %arg1: i32) -> (i32, i32) {
    %c0_i32 = arith.constant 0 : i32
    %c0_i32_0 = arith.constant 0 : i32
    %c0_i32_1 = arith.constant 0 : i32
    return %c0_i32, %c0_i32_0 : i32, i32
  }
  func.func @transform_2(%arg0: i32, %arg1: i32) -> (i32, i32, i32) {
    %c0_i32 = arith.constant 0 : i32
    %c0_i32_0 = arith.constant 0 : i32
    %c0_i32_1 = arith.constant 0 : i32
    %c0_i32_2 = arith.constant 0 : i32
    return %c0_i32, %c0_i32_0, %c0_i32_1 : i32, i32, i32
  }
  func.func @transform_3(%arg0: i32, %arg1: i32) -> (i32, i32) {
    %c0_i32 = arith.constant 0 : i32
    %c0_i32_0 = arith.constant 0 : i32
    %c0_i32_1 = arith.constant 0 : i32
    return %c0_i32, %c0_i32_0 : i32, i32
  }
  func.func @transform_4(%arg0: i32, %arg1: i32) -> (i32, i32, i32) {
    %c0_i32 = arith.constant 0 : i32
    %c0_i32_0 = arith.constant 0 : i32
    %c0_i32_1 = arith.constant 0 : i32
    %c0_i32_2 = arith.constant 0 : i32
    return %c0_i32, %c0_i32_0, %c0_i32_1 : i32, i32, i32
  }
  func.func @transform_5(%arg0: i32, %arg1: i32) -> (i32, i32) {
    %c0_i32 = arith.constant 0 : i32
    %c0_i32_0 = arith.constant 0 : i32
    %c0_i32_1 = arith.constant 0 : i32
    return %c0_i32, %c0_i32_0 : i32, i32
  }
  func.func @transform_6(%arg0: i32, %arg1: i32) -> (i32, i32) {
    %0 = arith.muli %arg0, %arg1 : i32
    %c0_i32 = arith.constant 0 : i32
    %c0_i32_0 = arith.constant 0 : i32
    return %0, %c0_i32 : i32, i32
  }
}

</mosaic_0001>

<bundles_post_ra>
// kernel: tpu_custom_call.1
= control target key start
LH: loop header
LB: loop body
LE: loop exit
PB: predicated region body
PF: predicated region fallthrough
CT: control target
= control target key end

     0   :  { %s1675_s0 = inlined_call_operand.hbm [shape: f32[48,144], index: 0, kind: input, shape index: {}]   ;;  %s1676_s1 = inlined_call_operand.vmem [shape: f32[48,16], index: 1, kind: input, shape index: {}]   ;;  %s1677_s2 = inlined_call_operand.vmem [shape: f32[3,16,128], index: 2, kind: input, shape index: {}]   ;;  %s1678_s3 = inlined_call_operand.vmem [shape: f32[1,128], index: 3, kind: input, shape index: {}]   ;;  %s1679_s4 = inlined_call_operand.hbm [shape: f32[3,128,128], index: 4, kind: input, shape index: {}]   ;;  %s1680_s5 = inlined_call_operand.vmem [shape: f32[1,128], index: 5, kind: input, shape index: {}]   ;;  %s1681_s6 = inlined_call_operand.hbm [shape: f32[48,128], index: 6, kind: output, shape index: {}]  }
   0x1   :  { %1692 = sst [smem:[#allocation20_spill]] %s1676_s1 }
   0x2   :  { %1693 = sst [smem:[#allocation21_spill]] %s1677_s2 }
   0x3   :  { %1694 = sst [smem:[#allocation22_spill]] %s1678_s3 }
   0x4   :  { %1695 = sst [smem:[#allocation23_spill]] %s1679_s4 }
   0x5   :  { %1696 = sst [smem:[#allocation24_spill]] %s1680_s5 }
   0x6   :  { %1697 = sst [smem:[#allocation25_spill]] %s1681_s6 }
   0x7   :  { %11 = vsyncpa [#allocation6], 0 }
   0x8   :  { %13 = vsyncpa [#allocation6 + $0x1], 0 }
   0x9   :  { %14 = vsyncpa [#allocation9], 0 }
   0xa   :  { %15 = vsyncpa [#allocation7], 0 }
   0xb   :  { %17 = vsyncpa [#allocation7 + $0x1], 0  ;;  %s1394_s21 = smov 0   ;;  %s1396_s22 = smov 0  }
   0xc   :  { %s1398_s23 = smov 0   ;;  %s1400_s24 = smov 0  }
   0xd   :  { %s1402_s25 = smov 0   ;;  %s1404_s26 = smov 0  }
   0xe   :  { %s1406_s27 = smov 0   ;;  %s1408_s28 = smov 0  }
   0xf   :  { %s1410_s29 = smov 0   ;;  %s1412_s30 = smov 0  }
  0x10   :  { %s1414_s7 = smov 0  }
  0x11 LB: > { %1698 = sst [smem:[#allocation14_spill]] %s1310_s21  ;;  %s937_s8 = sadd.s32 4294967295, %s1350_s7   ;;  %s1350_s7 = sphi %s1414_s7, %s23_s7   ;;  %s1346_s30 = sphi %s1412_s30, %s1730_s30   ;;  %s1342_s29 = sphi %s1410_s29, %s1729_s29   ;;  %s1338_s28 = sphi %s1408_s28, %s1719_s28   ;;  %s1334_s27 = sphi %s1406_s27, %s1728_s27   ;;  %s1330_s26 = sphi %s1404_s26, %s1727_s26   ;;  %s1326_s25 = sphi %s1402_s25, %s1726_s25   ;;  %s1322_s24 = sphi %s1400_s24, %s1725_s24   ;;  %s1318_s23 = sphi %s1398_s23, %s1724_s23   ;;  %s1314_s22 = sphi %s1396_s22, %s1723_s22   ;;  %s1310_s21 = sphi %s1394_s21, %s1722_s21  }
  0x12   : > { %1699 = sst [smem:[#allocation15_spill]] %s1346_s30  ;;  %s938_s9 = sadd.s32 4294967294, %s1350_s7  }
  0x13   : > { %p55_p0 = scmp.ne.s32.totalorder %s1326_s25, %s1322_s24  ;;  %p1450_p1 = scmp.eq.s32.totalorder %s937_s8, 0 }
  0x14   : > { %p185_p2 = scmp.ne.s32.totalorder %s1318_s23, %s1314_s22  ;;  %p186_p3 = scmp.eq.s32.totalorder %s937_s8, 5 }
  0x15   : > { %p1458_p4 = por %p1450_p1, %p55_p0  ;;  %p191_p5 = scmp.ne.s32.totalorder %s1314_s22, %s1310_s21 }
  0x16   : > { %p1464_p6 = por %p186_p3, %p185_p2  ;;  %p192_p7 = scmp.eq.s32.totalorder %s938_s9, 5 }
  0x17   : > { %p939_p8 = scmp.ge.s32.totalorder %s1350_s7, 1  ;;  %p199_p9 = scmp.lt.s32.totalorder %s1350_s7, 7 }
  0x18   : > { %s1702_s12 = scalar_select %p1464_p6, 1, 0 }
  0x19   : > { %p1470_p10 = por %p192_p7, %p191_p5  ;;  %p1474_p11 = pnand %p939_p8, %p199_p9 }
  0x1a   : > { %1703 = sst [smem:[#allocation16_spill]] %s1702_s12  ;;  %s1352_s18 = smov [#allocation8]  }
  0x1b   : > { %s1704_s13 = scalar_select %p1470_p10, 1, 0 }
  0x1c   : > { %s1707_s4 = sld [smem:[#allocation23_spill]]  ;;  %p1051_p12 = pneg %p1474_p11 }
  0x1d   : > { %1705 = sst [smem:[#allocation17_spill]] %s1704_s13  ;;  %s221_s19 = sshll.u32 %s1352_s18, 4  ;;  %s222_s19 = int_to_ptr.vmem [resolvable:$true] %s221_s19 }
  0x1e   : > { %p1052_p13 = pnand %p1051_p12, %p1450_p1  ;;  %s1353_s20 = smov 128  }
  0x1f   : > { %s1354_s24 = smov 8   ;;  %s32_s8 = sadd.s32 1, %s1342_s29 }
  0x20   : > { %s35_s9 = sadd.s32 1, %s1346_s30  ;;  %p33_p0 = scmp.ge.s32.totalorder %s32_s8, 3 }
  0x21   : > { %s42_s15 = sadd.s32 1, %s1330_s26  ;;  %p49_p2 = scmp.ne.s32.totalorder %s1330_s26, %s1326_s25 }
  0x22   : > { %s219_s17 = sshll.u32 %s1707_s4, 4  ;;  %p50_p3 = scmp.eq.s32.totalorder %s1350_s7, 0  ;;  %s220_s17 = int_to_ptr.hbm [resolvable:$true] %s219_s17 }
  0x23   : > { %1054 = dma.hbm_to_vmem [thread:$0]  (!%p1052_p13), %s220_s17, 6144, %s222_s19, [#allocation9], %s1353_s20, %s1353_s20, %s1354_s24  }
  0x24   : > { %s1732_s8 = smov (%p33_p0, %s32_s8), 0  ;;  %s1734_s9 = smov (!%p33_p0, %s35_s9), %s1346_s30 }
  0x25   : > { %1708 = sst [smem:[#allocation18_spill]] %s1732_s8  ;;  %s39_s16 = ssub.s32 %s1342_s29, %s1732_s8 }
  0x26   : > { %p1496_p5 = por %p50_p3, %p49_p2  ;;  %p37_p7 = scmp.ge.s32.totalorder %s1734_s9, 2 }
  0x27   : > { %p40_p8 = scmp.eq.s32.totalorder %s39_s16, 0  ;;  %s170_s17 = smul.u32 %s1342_s29, %s1346_s30 }
  0x28   : > { %s175_s19 = sadd.s32 1, %s1318_s23  ;;  %s1736_s9 = smov (%p37_p7, %s1734_s9), 0 }
  0x29   : > { %1710 = sst [smem:[#allocation19_spill]] %s1736_s9  ;;  %s171_s24 = smul.u32 %s1736_s9, %s1732_s8 }
  0x2a   : > { %s1506_s20 = scalar_select %p40_p8, %s1330_s26, %s42_s15  }
  0x2b   : > { %p1064_p9 = scmp.lt.s32.totalorder %s1350_s7, 6  ;;  %s238_s4 = sand.u32 1, %s1330_s26  }
  0x2c   : > { %s987_s13 = sshll.u32 %s1342_s29, 5  ;;  %s172_s21 = ssub.s32 %s170_s17, %s171_s24 }
  0x2d   : > { %p173_p12 = scmp.eq.s32.totalorder %s172_s21, 0  ;;  %s942_s6 = sshll.u32 %s238_s4, 5 }
  0x2e   : > { %s248_s16 = scalar_lea.hbm %s1675_s0, %s987_s13  ;;  %s242_s1 = scalar_lea.vmem [#allocation5], %s942_s6 }
  0x2f   : > { %s1517_s30 = scalar_select %p173_p12, %s1318_s23, %s175_s19  }
  0x30   : > { %s249_s3 = sshll.u32 %s248_s16, 4  ;;  %s251_s2 = sshll.u32 %s242_s1, 4  ;;  %s250_s3 = int_to_ptr.hbm [resolvable:$true] %s249_s3  ;;  %s252_s2 = int_to_ptr.vmem [resolvable:$true] %s251_s2 }
  0x31   : > { %p1056_p13 = pnand %p1064_p9, %p1496_p5  ;;  %s239_s15 = scalar_lea.sflag [#allocation6], %s238_s4 }
  0x32   : > { %s1355_s9 = smov 256   ;;  %s1356_s8 = smov 16  }
  0x33   : > { %1058 = dma.hbm_to_vmem [thread:$0]  (!%p1056_p13), %s250_s3, 512, %s252_s2, %s239_s15, %s1355_s9, %s1355_s9, %s1356_s8  }
  0x34   : > { %263 = sbr.rel (%p1474_p11) target bundleno = 824 (0x338), region = 44  ;;  %s265_s5 = sand.u32 (!%p1474_p11), 1, %s1326_s25  }
  0x35   : > { %s947_s21 = sshll.u32 (!%p1474_p11), %s265_s5, 5  ;;  %s266_s12 = scalar_lea.sflag (!%p1474_p11), [#allocation6], %s265_s5 }
  0x36   : > { %s1526_s13 = scalar_lea.vmem (!%p1474_p11), [#allocation5], %s947_s21 }
  0x39   : > { %1297 = dma.done.wait (%p1458_p4), %s266_s12, 512  }
  0x3a   : > { %1299 = vsyncadd (%p1458_p4), %s266_s12, 4294966784 }
  0x3b   : > { %1301 = dma.done.wait (%p1450_p1), [#allocation9], 6144  }
  0x3c   : > { %1303 = vsyncadd (%p1450_p1), [#allocation9], 4294961152  ;;  %s301_s1 = sand.u32 1, %s1314_s22   ;;  %p950_p11 = scmp.ne.s32.totalorder %s1338_s28, 0 }
  0x3d   : > { %s949_s2 = sshll.u32 %s301_s1, 4  ;;  %p951_p0 = scmp.ne.s32.totalorder (!%p950_p11), %s1334_s27, 0 }
  0x3e   : > { %s1539_s3 = scalar_lea.vmem [#allocation10], %s949_s2  ;;  %310 = sbr.rel (%p950_p11) target bundleno = 415 (0x19f), region = 56 }
  0x43   : > { %314 = sbr.rel (%p951_p0) target bundleno = 243 (0xf3), region = 60  ;;  %s1711_s11 = sld [smem:[#allocation21_spill]] (!%p951_p0) }
  0x44   : > { %s1712_s16 = sld [smem:[#allocation20_spill]] (!%p951_p0) }
  0x48   : > { %vm323_vm0 = vcmask 130048  }
  0x49   : > { %v322_v0 = vld [vmem:[%s1711_s11 + $0x8] sm:$0xff]  ;;  %v321_v2 = vld [vmem:[%s1711_s11] sm:$0xff]  ;;  %v959_v5 = vld [vmem:[%s1711_s11 + $0x18] sm:$0xff] }
  0x4a   : > { %v967_v1 = vld [vmem:[%s1711_s11 + $0x28] sm:$0xff]  ;;  %989 = vmatpush.msra.mxu3 %v322_v0  ;;  %v966_v3 = vld [vmem:[%s1711_s11 + $0x20] sm:$0xff]  ;;  %991 = vmatpush.msra.mxu1 %v959_v5  ;;  %v958_v6 = vld [vmem:[%s1711_s11 + $0x10] sm:$0xff] }
  0x4b   : > { %993 = vmatpush.msra.mxu2 %v967_v1  ;;  %v316_v4 = vld [vmem:[%s1712_s16 + $0x8] sm:$0xff]  ;;  %356 = vmatpush.msra.mxu0 %v322_v0  ;;  %v315_v7 = vld [vmem:[%s1712_s16] sm:$0xff]  ;;  %v317_v8 = vld [vmem:[%s1712_s16 + $0x10] sm:$0xff] }
  0x4c   : > { %990 = vmatpush.msra.mxu3 %v321_v2  ;;  %992 = vmatpush.msra.mxu1 %v958_v6  ;;  %v318_v9 = vld [vmem:[%s1712_s16 + $0x18] sm:$0xff]  ;;  %v319_v10 = vld [vmem:[%s1712_s16 + $0x20] sm:$0xff]  ;;  %v320_v11 = vld [vmem:[%s1712_s16 + $0x28] sm:$0xff] }
  0x4d   : > { %994 = vmatpush.msra.mxu2 %v966_v3  ;;  %953 = vmatmul.msk.f32.vlgmr.msra.gmra.mxu3 %vm323_vm0, %v316_v4 }
  0x4e   : > { %969 = vmatmul.msk.f32.vlgmr.msra.gmra.mxu2 %vm323_vm0, %v316_v4  ;;  %357 = vmatpush.msra.mxu0 %v321_v2 }
  0x4f   : > { %961 = vmatmul.msk.f32.vlgmr.msra.gmra.mxu1 %vm323_vm0, %v316_v4  ;;  %952 = vmatmul.msk.f32.vlgmr.msra.gmra.mxu0 %vm323_vm0, %v315_v7 }
  0x50   : > { %400 = vmatpush.msrb.mxu0 %v959_v5 }
  0x52   : > { %401 = vmatpush.msrb.mxu0 %v958_v6 }
  0x54   : > { %444 = vmatpush.msra.mxu0 %v967_v1 }
  0x55   : > { %954 = vmatmul.msk.f32.gmra.mxu3 %vm323_vm0, %v317_v8 }
  0x56   : > { %970 = vmatmul.msk.f32.gmra.mxu2 %vm323_vm0, %v317_v8  ;;  %445 = vmatpush.msra.mxu0 %v966_v3 }
  0x57   : > { %962 = vmatmul.msk.f32.gmra.mxu1 %vm323_vm0, %v317_v8  ;;  %960 = vmatmul.msk.f32.vlgmr.msrb.gmra.mxu0 %vm323_vm0, %v315_v7 }
  0x5d   : > { %955 = vmatmul.msk.f32.gmra.mxu3 %vm323_vm0, %v318_v9 }
  0x5e   : > { %971 = vmatmul.msk.f32.gmra.mxu2 %vm323_vm0, %v318_v9 }
  0x5f   : > { %963 = vmatmul.msk.f32.gmra.mxu1 %vm323_vm0, %v318_v9  ;;  %968 = vmatmul.msk.f32.vlgmr.msra.gmra.mxu0 %vm323_vm0, %v315_v7 }
  0x65   : > { %956 = vmatmul.msk.f32.gmra.mxu3 %vm323_vm0, %v319_v10 }
  0x66   : > { %972 = vmatmul.msk.f32.gmra.mxu2 %vm323_vm0, %v319_v10 }
  0x67   : > { %964 = vmatmul.msk.f32.gmra.mxu1 %vm323_vm0, %v319_v10 }
  0x6d   : > { %957 = vmatmul.msk.f32.gmra.mxu3 %vm323_vm0, %v320_v11 }
  0x6e   : > { %973 = vmatmul.msk.f32.gmra.mxu2 %vm323_vm0, %v320_v11 }
  0x6f   : > { %965 = vmatmul.msk.f32.gmra.mxu1 %vm323_vm0, %v320_v11 }
  0xcc   : > { %v406_v12 = vpop.f32.mrf.mxu1  ;;  %v359_v13 = vpop.f32.mrf.mxu0 }
  0xcd   : > { %422 = vst [vmem:[#allocation2 + $0x80] sm:$0xff] %v406_v12 }
  0xce   : > { %377 = vst [vmem:[#allocation2] sm:$0xff] %v359_v13 }
  0xd0   : > { %v362_v14 = vpop.f32.mrf.mxu3 }
  0xd1   : > { %v450_v15 = vpop.f32.mrf.mxu2  ;;  %378 = vst [vmem:[#allocation2 + $0x38] sm:$0xff] %v362_v14 }
  0xd2   : > { %466 = vst [vmem:[#allocation2 + $0x48] sm:$0xff] %v450_v15 }
  0xd4   : > { %v409_v16 = vpop.f32.mrf.mxu1  ;;  %v403_v17 = vpop.f32.mrf.mxu0 }
  0xd5   : > { %423 = vst [vmem:[#allocation2 + $0x88] sm:$0xff] %v409_v16 }
  0xd6   : > { %421 = vst [vmem:[#allocation2 + $0x70] sm:$0xff] %v403_v17 }
  0xd8   : > { %v365_v18 = vpop.f32.mrf.mxu3 }
  0xd9   : > { %v453_v19 = vpop.f32.mrf.mxu2  ;;  %379 = vst [vmem:[#allocation2 + $0x78] sm:$0xff] %v365_v18 }
  0xda   : > { %467 = vst [vmem:[#allocation2 + $0x30] sm:$0xff] %v453_v19 }
  0xdc   : > { %v412_v20 = vpop.f32.mrf.mxu1  ;;  %v447_v21 = vpop.f32.mrf.mxu0 }
  0xdd   : > { %424 = vst [vmem:[#allocation2 + $0x40] sm:$0xff] %v412_v20 }
  0xde   : > { %465 = vst [vmem:[#allocation2 + $0x10] sm:$0xff] %v447_v21 }
  0xe0   : > { %v368_v22 = vpop.f32.mrf.mxu3 }
  0xe1   : > { %v456_v23 = vpop.f32.mrf.mxu2  ;;  %380 = vst [vmem:[#allocation2 + $0x58] sm:$0xff] %v368_v22 }
  0xe2   : > { %468 = vst [vmem:[#allocation2 + $0x18] sm:$0xff] %v456_v23 }
  0xe4   : > { %v415_v24 = vpop.f32.mrf.mxu1 }
  0xe5   : > { %425 = vst [vmem:[#allocation2 + $0x50] sm:$0xff] %v415_v24 }
  0xe8   : > { %v371_v25 = vpop.f32.mrf.mxu3 }
  0xe9   : > { %v459_v26 = vpop.f32.mrf.mxu2  ;;  %381 = vst [vmem:[#allocation2 + $0x20] sm:$0xff] %v371_v25 }
  0xea   : > { %469 = vst [vmem:[#allocation2 + $0x68] sm:$0xff] %v459_v26 }
  0xec   : > { %v418_v27 = vpop.f32.mrf.mxu1 }
  0xed   : > { %426 = vst [vmem:[#allocation2 + $0x28] sm:$0xff] %v418_v27 }
  0xf0   : > { %v374_v28 = vpop.f32.mrf.mxu3 }
  0xf1   : > { %v462_v29 = vpop.f32.mrf.mxu2  ;;  %382 = vst [vmem:[#allocation2 + $0x8] sm:$0xff] %v374_v28 }
  0xf2   : > { %470 = vst [vmem:[#allocation2 + $0x60] sm:$0xff] %v462_v29 }
  0xf3 PF: > { %v490_v30 = vld [vmem:[#allocation2 + $0x18] sm:$0xff]  ;;  %v489_v31 = vld [vmem:[#allocation2 + $0x30] sm:$0xff]  ;;  %v488_v32 = vld [vmem:[#allocation2 + $0x48] sm:$0xff]  ;;  %vm498_vm1 = vcmask 130048   ;;  %s1713_s5 = sld [smem:[#allocation22_spill]]  ;;  %s974_s21 = sshll.u32 %s1334_s27, 4 }
  0xf4   : > { %505 = vmatpush.msra.mxu0 %v490_v30  ;;  %995 = vmatpush.msra.mxu2 %v490_v30  ;;  %v487_v33 = vld [vmem:[#allocation2 + $0x10] sm:$0xff]  ;;  %v491_v35 = vld [vmem:[#allocation2 + $0x68] sm:$0xff]  ;;  %v472_v37 = vld [vmem:[%s1526_s13 + $0x8] sm:$0xff]  ;;  %s553_s12 = scalar_lea.vmem [#allocation3], %s974_s21 }
  0xf5   : > { %v486_v36 = vld [vmem:[#allocation2 + $0x28] sm:$0xff]  ;;  %v485_v38 = vld [vmem:[#allocation2 + $0x50] sm:$0xff]  ;;  %v484_v39 = vld [vmem:[#allocation2 + $0x40] sm:$0xff] }
  0xf6   : > { %506 = vmatpush.msra.mxu0 %v489_v31  ;;  %996 = vmatpush.msra.mxu2 %v489_v31  ;;  %v483_v40 = vld [vmem:[#allocation2 + $0x88] sm:$0xff]  ;;  %v482_v41 = vld [vmem:[#allocation2 + $0x80] sm:$0xff]  ;;  %v481_v43 = vld [vmem:[#allocation2 + $0x70] sm:$0xff] }
  0xf7   : > { %v474_v42 = vld [vmem:[%s1526_s13 + $0x18] sm:$0xff]  ;;  %v479_v45 = vld [vmem:[#allocation2 + $0x20] sm:$0xff]  ;;  %v478_v46 = vld [vmem:[#allocation2 + $0x58] sm:$0xff] }
  0xf8   : > { %507 = vmatpush.msra.mxu0 %v488_v32  ;;  %997 = vmatpush.msra.mxu2 %v488_v32  ;;  %v480_v44 = vld [vmem:[#allocation2 + $0x8] sm:$0xff]  ;;  %v477_v47 = vld [vmem:[#allocation2 + $0x78] sm:$0xff]  ;;  %v475_v49 = vld [vmem:[#allocation2] sm:$0xff] }
  0xf9   : > { %v492_v34 = vld [vmem:[#allocation2 + $0x60] sm:$0xff]  ;;  %v476_v48 = vld [vmem:[#allocation2 + $0x38] sm:$0xff]  ;;  %v471_v50 = vld [vmem:[%s1526_s13] sm:$0xff] }
  0xfa   : > { %542 = vmatpush.msra.mxu1 %v492_v34  ;;  %508 = vmatpush.msra.mxu0 %v487_v33  ;;  %v473_v51 = vld [vmem:[%s1526_s13 + $0x10] sm:$0xff] }
  0xfb   : > { %998 = vmatpush.msra.mxu2 %v487_v33  ;;  %v1162_v53 = vld [vmem:[%s1713_s5] ss:$0 sm:$0xff] }
  0xfc   : > { %543 = vmatpush.msra.mxu1 %v491_v35  ;;  %509 = vmatpush.msra.mxu0 %v486_v36 }
  0xfd   : > { %999 = vmatpush.msra.mxu2 %v486_v36  ;;  %975 = vmatmul.msk.f32.vlgmr.msra.gmra.mxu1 %vm498_vm1, %v472_v37 }
  0xfe   : > { %510 = vmatpush.msra.mxu0 %v485_v38 }
  0xff   : > { %1000 = vmatpush.msra.mxu2 %v485_v38 }
 0x100   : > { %511 = vmatpush.msra.mxu0 %v484_v39 }
 0x101   : > { %1001 = vmatpush.msra.mxu2 %v484_v39 }
 0x102   : > { %512 = vmatpush.msra.mxu0 %v483_v40 }
 0x103   : > { %1002 = vmatpush.msra.mxu2 %v483_v40 }
 0x104   : > { %513 = vmatpush.msra.mxu0 %v482_v41 }
 0x105   : > { %1003 = vmatpush.msra.mxu2 %v482_v41  ;;  %976 = vmatmul.msk.f32.gmra.mxu1 %vm498_vm1, %v474_v42 }
 0x106   : > { %514 = vmatpush.msra.mxu0 %v481_v43 }
 0x107   : > { %1004 = vmatpush.msra.mxu2 %v481_v43 }
 0x108   : > { %515 = vmatpush.msra.mxu0 %v480_v44 }
 0x109   : > { %1005 = vmatpush.msra.mxu2 %v480_v44 }
 0x10a   : > { %516 = vmatpush.msra.mxu0 %v479_v45 }
 0x10b   : > { %1006 = vmatpush.msra.mxu2 %v479_v45 }
 0x10c   : > { %517 = vmatpush.msra.mxu0 %v478_v46 }
 0x10d   : > { %1007 = vmatpush.msra.mxu2 %v478_v46 }
 0x10e   : > { %518 = vmatpush.msra.mxu0 %v477_v47 }
 0x10f   : > { %1008 = vmatpush.msra.mxu2 %v477_v47 }
 0x110   : > { %519 = vmatpush.msra.mxu0 %v476_v48 }
 0x111   : > { %1009 = vmatpush.msra.mxu2 %v476_v48 }
 0x112   : > { %520 = vmatpush.msra.mxu0 %v475_v49 }
 0x113   : > { %1010 = vmatpush.msra.mxu2 %v475_v49  ;;  %521 = vmatmul.f32.vlgmr.msra.gmra.mxu0 %v471_v50 }
 0x114   : > { %524 = vmatmul.f32.vlgmr.msra.gmra.mxu2 %v473_v51 }
 0x17a   : > { %v545_v52 = vpop.f32.mrf.mxu1 }
 0x182   : > { %v548_v59 = vpop.f32.mrf.mxu1 }
 0x190   : > { %v522_v54 = vpop.f32.mrf.mxu0 }
 0x191   : > { %v523_v55 = vadd.f32 %v1162_v53, %v522_v54 }
 0x193   : > { %v546_v56 = vadd.f32 %v545_v52, %v523_v55 }
 0x195   : > { %v551_v57 = vmax.f32 %v546_v56, 0.0 }
 0x197   : > { %v525_v58 = vpop.f32.mrf.mxu2  ;;  %554 = vst [vmem:[%s553_s12] sm:$0xff] %v551_v57 }
 0x198   : > { %v526_v60 = vadd.f32 %v1162_v53, %v525_v58 }
 0x19a   : > { %v549_v61 = vadd.f32 %v548_v59, %v526_v60 }
 0x19c   : > { %v552_v62 = vmax.f32 %v549_v61, 0.0 }
 0x19e   : > { %555 = vst [vmem:[%s553_s12 + $0x8] sm:$0xff] %v552_v62 }
 0x19f PF: > { %p977_p1 = scmp.ne.s32.totalorder %s1338_s28, 1 }
 0x1a0   : > { %p978_p4 = scmp.ne.s32.totalorder (!%p977_p1), %s1334_s27, 0 }
 0x1a1   : > { %559 = sbr.rel (%p977_p1) target bundleno = 802 (0x322), region = 64 }
 0x1a6   : > { %563 = sbr.rel (%p978_p4) target bundleno = 632 (0x278), region = 68 }
 0x1ab   : > { %v701_v63 = vld [vmem:[#allocation8 + $0x178] sm:$0xff]  ;;  %v700_v0 = vld [vmem:[#allocation8 + $0x170] sm:$0xff]  ;;  %v699_v3 = vld [vmem:[#allocation8 + $0x168] sm:$0xff] }
 0x1ac   : > { %702 = vmatpush.msra.mxu2 %v701_v63  ;;  %v643_v1 = vld [vmem:[#allocation8 + $0xf8] sm:$0xff]  ;;  %v642_v4 = vld [vmem:[#allocation8 + $0xf0] sm:$0xff]  ;;  %v641_v6 = vld [vmem:[#allocation8 + $0xe8] sm:$0xff] }
 0x1ad   : > { %v585_v2 = vld [vmem:[#allocation8 + $0x78] sm:$0xff]  ;;  %644 = vmatpush.msra.mxu1 %v643_v1  ;;  %v584_v5 = vld [vmem:[#allocation8 + $0x70] sm:$0xff]  ;;  %v583_v7 = vld [vmem:[#allocation8 + $0x68] sm:$0xff] }
 0x1ae   : > { %1011 = vmatpush.msra.mxu3 %v585_v2  ;;  %703 = vmatpush.msra.mxu2 %v700_v0  ;;  %v698_v8 = vld [vmem:[#allocation8 + $0x160] sm:$0xff]  ;;  %v697_v11 = vld [vmem:[#allocation8 + $0x158] sm:$0xff]  ;;  %v696_v14 = vld [vmem:[#allocation8 + $0x150] sm:$0xff] }
 0x1af   : > { %586 = vmatpush.msra.mxu0 %v585_v2  ;;  %645 = vmatpush.msra.mxu1 %v642_v4  ;;  %v640_v9 = vld [vmem:[#allocation8 + $0xe0] sm:$0xff]  ;;  %v639_v12 = vld [vmem:[#allocation8 + $0xd8] sm:$0xff]  ;;  %v638_v15 = vld [vmem:[#allocation8 + $0xd0] sm:$0xff] }
 0x1b0   : > { %1012 = vmatpush.msra.mxu3 %v584_v5  ;;  %704 = vmatpush.msra.mxu2 %v699_v3  ;;  %v582_v10 = vld [vmem:[#allocation8 + $0x60] sm:$0xff]  ;;  %v581_v13 = vld [vmem:[#allocation8 + $0x58] sm:$0xff]  ;;  %v580_v16 = vld [vmem:[#allocation8 + $0x50] sm:$0xff] }
 0x1b1   : > { %587 = vmatpush.msra.mxu0 %v584_v5  ;;  %646 = vmatpush.msra.mxu1 %v641_v6  ;;  %v695_v17 = vld [vmem:[#allocation8 + $0x148] sm:$0xff]  ;;  %v694_v20 = vld [vmem:[#allocation8 + $0x140] sm:$0xff]  ;;  %v693_v23 = vld [vmem:[#allocation8 + $0x138] sm:$0xff] }
 0x1b2   : > { %1013 = vmatpush.msra.mxu3 %v583_v7  ;;  %705 = vmatpush.msra.mxu2 %v698_v8  ;;  %v637_v18 = vld [vmem:[#allocation8 + $0xc8] sm:$0xff]  ;;  %v636_v21 = vld [vmem:[#allocation8 + $0xc0] sm:$0xff]  ;;  %v635_v24 = vld [vmem:[#allocation8 + $0xb8] sm:$0xff] }
 0x1b3   : > { %588 = vmatpush.msra.mxu0 %v583_v7  ;;  %647 = vmatpush.msra.mxu1 %v640_v9  ;;  %v579_v19 = vld [vmem:[#allocation8 + $0x48] sm:$0xff]  ;;  %v578_v22 = vld [vmem:[#allocation8 + $0x40] sm:$0xff]  ;;  %v577_v25 = vld [vmem:[#allocation8 + $0x38] sm:$0xff] }
 0x1b4   : > { %1014 = vmatpush.msra.mxu3 %v582_v10  ;;  %706 = vmatpush.msra.mxu2 %v697_v11  ;;  %v692_v26 = vld [vmem:[#allocation8 + $0x130] sm:$0xff]  ;;  %v691_v29 = vld [vmem:[#allocation8 + $0x128] sm:$0xff]  ;;  %v690_v32 = vld [vmem:[#allocation8 + $0x120] sm:$0xff] }
 0x1b5   : > { %589 = vmatpush.msra.mxu0 %v582_v10  ;;  %648 = vmatpush.msra.mxu1 %v639_v12  ;;  %v634_v27 = vld [vmem:[#allocation8 + $0xb0] sm:$0xff]  ;;  %v633_v30 = vld [vmem:[#allocation8 + $0xa8] sm:$0xff]  ;;  %v632_v33 = vld [vmem:[#allocation8 + $0xa0] sm:$0xff] }
 0x1b6   : > { %1015 = vmatpush.msra.mxu3 %v581_v13  ;;  %707 = vmatpush.msra.mxu2 %v696_v14  ;;  %v576_v28 = vld [vmem:[#allocation8 + $0x30] sm:$0xff]  ;;  %v575_v31 = vld [vmem:[#allocation8 + $0x28] sm:$0xff]  ;;  %v574_v34 = vld [vmem:[#allocation8 + $0x20] sm:$0xff] }
 0x1b7   : > { %590 = vmatpush.msra.mxu0 %v581_v13  ;;  %649 = vmatpush.msra.mxu1 %v638_v15  ;;  %v689_v35 = vld [vmem:[#allocation8 + $0x118] sm:$0xff]  ;;  %v688_v38 = vld [vmem:[#allocation8 + $0x110] sm:$0xff]  ;;  %v687_v41 = vld [vmem:[#allocation8 + $0x108] sm:$0xff] }
 0x1b8   : > { %1016 = vmatpush.msra.mxu3 %v580_v16  ;;  %708 = vmatpush.msra.mxu2 %v695_v17  ;;  %v631_v36 = vld [vmem:[#allocation8 + $0x98] sm:$0xff]  ;;  %v630_v39 = vld [vmem:[#allocation8 + $0x90] sm:$0xff]  ;;  %v629_v42 = vld [vmem:[#allocation8 + $0x88] sm:$0xff] }
 0x1b9   : > { %591 = vmatpush.msra.mxu0 %v580_v16  ;;  %650 = vmatpush.msra.mxu1 %v637_v18  ;;  %v573_v37 = vld [vmem:[#allocation8 + $0x18] sm:$0xff]  ;;  %v572_v40 = vld [vmem:[#allocation8 + $0x10] sm:$0xff]  ;;  %v571_v43 = vld [vmem:[#allocation8 + $0x8] sm:$0xff] }
 0x1ba   : > { %1017 = vmatpush.msra.mxu3 %v579_v19  ;;  %709 = vmatpush.msra.mxu2 %v694_v20  ;;  %v686_v44 = vld [vmem:[#allocation8 + $0x100] sm:$0xff]  ;;  %v565_v48 = vld [vmem:[#allocation3 + $0x8] sm:$0xff]  ;;  %v566_v49 = vld [vmem:[#allocation3 + $0x10] sm:$0xff] }
 0x1bb   : > { %592 = vmatpush.msra.mxu0 %v579_v19  ;;  %651 = vmatpush.msra.mxu1 %v636_v21  ;;  %v564_v45 = vld [vmem:[#allocation3] sm:$0xff]  ;;  %v567_v50 = vld [vmem:[#allocation3 + $0x18] sm:$0xff]  ;;  %v569_v52 = vld [vmem:[#allocation3 + $0x28] sm:$0xff] }
 0x1bc   : > { %1018 = vmatpush.msra.mxu3 %v578_v22  ;;  %710 = vmatpush.msra.mxu2 %v693_v23  ;;  %v628_v46 = vld [vmem:[#allocation8 + $0x80] sm:$0xff] }
 0x1bd   : > { %593 = vmatpush.msra.mxu0 %v578_v22  ;;  %652 = vmatpush.msra.mxu1 %v635_v24  ;;  %v570_v47 = vld [vmem:[#allocation8] sm:$0xff] }
 0x1be   : > { %1019 = vmatpush.msra.mxu3 %v577_v25  ;;  %711 = vmatpush.msra.mxu2 %v692_v26  ;;  %v568_v51 = vld [vmem:[#allocation3 + $0x20] sm:$0xff] }
 0x1bf   : > { %594 = vmatpush.msra.mxu0 %v577_v25  ;;  %653 = vmatpush.msra.mxu1 %v634_v27 }
 0x1c0   : > { %1020 = vmatpush.msra.mxu3 %v576_v28  ;;  %712 = vmatpush.msra.mxu2 %v691_v29 }
 0x1c1   : > { %595 = vmatpush.msra.mxu0 %v576_v28  ;;  %654 = vmatpush.msra.mxu1 %v633_v30 }
 0x1c2   : > { %1021 = vmatpush.msra.mxu3 %v575_v31  ;;  %713 = vmatpush.msra.mxu2 %v690_v32 }
 0x1c3   : > { %596 = vmatpush.msra.mxu0 %v575_v31  ;;  %655 = vmatpush.msra.mxu1 %v632_v33 }
 0x1c4   : > { %1022 = vmatpush.msra.mxu3 %v574_v34  ;;  %714 = vmatpush.msra.mxu2 %v689_v35 }
 0x1c5   : > { %597 = vmatpush.msra.mxu0 %v574_v34  ;;  %656 = vmatpush.msra.mxu1 %v631_v36 }
 0x1c6   : > { %1023 = vmatpush.msra.mxu3 %v573_v37  ;;  %715 = vmatpush.msra.mxu2 %v688_v38 }
 0x1c7   : > { %598 = vmatpush.msra.mxu0 %v573_v37  ;;  %657 = vmatpush.msra.mxu1 %v630_v39 }
 0x1c8   : > { %1024 = vmatpush.msra.mxu3 %v572_v40  ;;  %716 = vmatpush.msra.mxu2 %v687_v41 }
 0x1c9   : > { %599 = vmatpush.msra.mxu0 %v572_v40  ;;  %658 = vmatpush.msra.mxu1 %v629_v42 }
 0x1ca   : > { %1025 = vmatpush.msra.mxu3 %v571_v43  ;;  %717 = vmatpush.msra.mxu2 %v686_v44 }
 0x1cb   : > { %600 = vmatpush.msra.mxu0 %v571_v43  ;;  %718 = vmatmul.f32.vlgmr.msra.gmra.mxu2 %v564_v45 }
 0x1cc   : > { %659 = vmatpush.msra.mxu1 %v628_v46  ;;  %1026 = vmatpush.msra.mxu3 %v570_v47 }
 0x1cd   : > { %660 = vmatmul.f32.vlgmr.msra.gmra.mxu1 %v564_v45  ;;  %605 = vmatmul.f32.vlgmr.msra.gmra.mxu3 %v565_v48 }
 0x1ce   : > { %601 = vmatpush.msra.mxu0 %v570_v47 }
 0x1cf   : > { %602 = vmatmul.f32.vlgmr.msra.gmra.mxu0 %v564_v45 }
 0x1d3   : > { %721 = vmatmul.f32.gmra.mxu2 %v565_v48 }
 0x1d5   : > { %663 = vmatmul.f32.gmra.mxu1 %v565_v48  ;;  %608 = vmatmul.f32.gmra.mxu3 %v566_v49 }
 0x1db   : > { %724 = vmatmul.f32.gmra.mxu2 %v566_v49 }
 0x1dd   : > { %666 = vmatmul.f32.gmra.mxu1 %v566_v49  ;;  %611 = vmatmul.f32.gmra.mxu3 %v567_v50 }
 0x1e3   : > { %727 = vmatmul.f32.gmra.mxu2 %v567_v50 }
 0x1e5   : > { %669 = vmatmul.f32.gmra.mxu1 %v567_v50  ;;  %614 = vmatmul.f32.gmra.mxu3 %v568_v51 }
 0x1eb   : > { %730 = vmatmul.f32.gmra.mxu2 %v568_v51 }
 0x1ed   : > { %672 = vmatmul.f32.gmra.mxu1 %v568_v51  ;;  %617 = vmatmul.f32.gmra.mxu3 %v569_v52 }
 0x1f3   : > { %733 = vmatmul.f32.gmra.mxu2 %v569_v52 }
 0x1f5   : > { %675 = vmatmul.f32.gmra.mxu1 %v569_v52 }
 0x24a   : > { %v661_v53 = vpop.f32.mrf.mxu1 }
 0x24b   : > { %679 = vst [vmem:[#allocation4 + $0x60] sm:$0xff] %v661_v53 }
 0x24c   : > { %v603_v55 = vpop.f32.mrf.mxu0 }
 0x24d   : > { %621 = vst [vmem:[#allocation4 + $0x88] sm:$0xff] %v603_v55 }
 0x24e   : > { %v719_v54 = vpop.f32.mrf.mxu2 }
 0x24f   : > { %737 = vst [vmem:[#allocation4 + $0x58] sm:$0xff] %v719_v54 }
 0x250   : > { %v606_v56 = vpop.f32.mrf.mxu3 }
 0x251   : > { %622 = vst [vmem:[#allocation4 + $0x48] sm:$0xff] %v606_v56 }
 0x252   : > { %v664_v57 = vpop.f32.mrf.mxu1 }
 0x253   : > { %680 = vst [vmem:[#allocation4 + $0x78] sm:$0xff] %v664_v57 }
 0x256   : > { %v722_v58 = vpop.f32.mrf.mxu2 }
 0x257   : > { %738 = vst [vmem:[#allocation4 + $0x70] sm:$0xff] %v722_v58 }
 0x258   : > { %v609_v59 = vpop.f32.mrf.mxu3 }
 0x259   : > { %623 = vst [vmem:[#allocation4 + $0x10] sm:$0xff] %v609_v59 }
 0x25a   : > { %v667_v60 = vpop.f32.mrf.mxu1 }
 0x25b   : > { %681 = vst [vmem:[#allocation4 + $0x28] sm:$0xff] %v667_v60 }
 0x25e   : > { %v725_v61 = vpop.f32.mrf.mxu2 }
 0x25f   : > { %739 = vst [vmem:[#allocation4 + $0x38] sm:$0xff] %v725_v61 }
 0x260   : > { %v612_v62 = vpop.f32.mrf.mxu3 }
 0x261   : > { %624 = vst [vmem:[#allocation4 + $0x20] sm:$0xff] %v612_v62 }
 0x262   : > { %v670_v63 = vpop.f32.mrf.mxu1 }
 0x263   : > { %682 = vst [vmem:[#allocation4 + $0x8] sm:$0xff] %v670_v63 }
 0x266   : > { %v728_v0 = vpop.f32.mrf.mxu2 }
 0x267   : > { %740 = vst [vmem:[#allocation4 + $0x68] sm:$0xff] %v728_v0 }
 0x268   : > { %v615_v1 = vpop.f32.mrf.mxu3 }
 0x269   : > { %625 = vst [vmem:[#allocation4 + $0x50] sm:$0xff] %v615_v1 }
 0x26a   : > { %v673_v2 = vpop.f32.mrf.mxu1 }
 0x26b   : > { %683 = vst [vmem:[#allocation4 + $0x30] sm:$0xff] %v673_v2 }
 0x26e   : > { %v731_v3 = vpop.f32.mrf.mxu2 }
 0x26f   : > { %741 = vst [vmem:[#allocation4 + $0x80] sm:$0xff] %v731_v3 }
 0x270   : > { %v618_v4 = vpop.f32.mrf.mxu3 }
 0x271   : > { %626 = vst [vmem:[#allocation4 + $0x18] sm:$0xff] %v618_v4 }
 0x272   : > { %v676_v5 = vpop.f32.mrf.mxu1 }
 0x273   : > { %684 = vst [vmem:[#allocation4 + $0x40] sm:$0xff] %v676_v5 }
 0x276   : > { %v734_v6 = vpop.f32.mrf.mxu2 }
 0x277   : > { %742 = vst [vmem:[#allocation4] sm:$0xff] %v734_v6 }
 0x278 PF: > { %v762_v7 = vld [vmem:[#allocation4 + $0x68] sm:$0xff]  ;;  %v761_v8 = vld [vmem:[#allocation4 + $0x38] sm:$0xff]  ;;  %v760_v9 = vld [vmem:[#allocation4 + $0x70] sm:$0xff]  ;;  %vm769_vm2 = vcmask 130048   ;;  %s1714_s6 = sld [smem:[#allocation24_spill]] }
 0x279   : > { %776 = vmatpush.msra.mxu0 %v762_v7  ;;  %1027 = vmatpush.msra.mxu2 %v762_v7  ;;  %v759_v10 = vld [vmem:[#allocation4 + $0x58] sm:$0xff]  ;;  %v763_v12 = vld [vmem:[#allocation4 + $0x80] sm:$0xff]  ;;  %v757_v15 = vld [vmem:[#allocation4 + $0x30] sm:$0xff] }
 0x27a   : > { %v758_v13 = vld [vmem:[#allocation4 + $0x40] sm:$0xff]  ;;  %v744_v14 = vld [vmem:[%s1526_s13 + $0x8] sm:$0xff]  ;;  %v756_v16 = vld [vmem:[#allocation4 + $0x8] sm:$0xff] }
 0x27b   : > { %777 = vmatpush.msra.mxu0 %v761_v8  ;;  %1028 = vmatpush.msra.mxu2 %v761_v8  ;;  %v755_v17 = vld [vmem:[#allocation4 + $0x28] sm:$0xff]  ;;  %v754_v18 = vld [vmem:[#allocation4 + $0x78] sm:$0xff]  ;;  %v753_v20 = vld [vmem:[#allocation4 + $0x60] sm:$0xff] }
 0x27c   : > { %v746_v19 = vld [vmem:[%s1526_s13 + $0x18] sm:$0xff]  ;;  %v752_v21 = vld [vmem:[#allocation4 + $0x18] sm:$0xff]  ;;  %v751_v22 = vld [vmem:[#allocation4 + $0x50] sm:$0xff] }
 0x27d   : > { %778 = vmatpush.msra.mxu0 %v760_v9  ;;  %1029 = vmatpush.msra.mxu2 %v760_v9  ;;  %v750_v23 = vld [vmem:[#allocation4 + $0x20] sm:$0xff]  ;;  %v749_v24 = vld [vmem:[#allocation4 + $0x10] sm:$0xff]  ;;  %v748_v25 = vld [vmem:[#allocation4 + $0x48] sm:$0xff] }
 0x27e   : > { %v764_v11 = vld [vmem:[#allocation4] sm:$0xff]  ;;  %v747_v26 = vld [vmem:[#allocation4 + $0x88] sm:$0xff]  ;;  %v743_v27 = vld [vmem:[%s1526_s13] sm:$0xff] }
 0x27f   : > { %813 = vmatpush.msra.mxu1 %v764_v11  ;;  %779 = vmatpush.msra.mxu0 %v759_v10  ;;  %v745_v28 = vld [vmem:[%s1526_s13 + $0x10] sm:$0xff] }
 0x280   : > { %1030 = vmatpush.msra.mxu2 %v759_v10  ;;  %v1163_v30 = vld [vmem:[%s1714_s6] ss:$0 sm:$0xff] }
 0x281   : > { %814 = vmatpush.msra.mxu1 %v763_v12  ;;  %780 = vmatpush.msra.mxu0 %v758_v13 }
 0x282   : > { %1031 = vmatpush.msra.mxu2 %v758_v13  ;;  %979 = vmatmul.msk.f32.vlgmr.msra.gmra.mxu1 %vm769_vm2, %v744_v14 }
 0x283   : > { %781 = vmatpush.msra.mxu0 %v757_v15 }
 0x284   : > { %1032 = vmatpush.msra.mxu2 %v757_v15 }
 0x285   : > { %782 = vmatpush.msra.mxu0 %v756_v16 }
 0x286   : > { %1033 = vmatpush.msra.mxu2 %v756_v16 }
 0x287   : > { %783 = vmatpush.msra.mxu0 %v755_v17 }
 0x288   : > { %1034 = vmatpush.msra.mxu2 %v755_v17 }
 0x289   : > { %784 = vmatpush.msra.mxu0 %v754_v18 }
 0x28a   : > { %1035 = vmatpush.msra.mxu2 %v754_v18  ;;  %980 = vmatmul.msk.f32.gmra.mxu1 %vm769_vm2, %v746_v19 }
 0x28b   : > { %785 = vmatpush.msra.mxu0 %v753_v20 }
 0x28c   : > { %1036 = vmatpush.msra.mxu2 %v753_v20 }
 0x28d   : > { %786 = vmatpush.msra.mxu0 %v752_v21 }
 0x28e   : > { %1037 = vmatpush.msra.mxu2 %v752_v21 }
 0x28f   : > { %787 = vmatpush.msra.mxu0 %v751_v22 }
 0x290   : > { %1038 = vmatpush.msra.mxu2 %v751_v22 }
 0x291   : > { %788 = vmatpush.msra.mxu0 %v750_v23 }
 0x292   : > { %1039 = vmatpush.msra.mxu2 %v750_v23 }
 0x293   : > { %789 = vmatpush.msra.mxu0 %v749_v24 }
 0x294   : > { %1040 = vmatpush.msra.mxu2 %v749_v24 }
 0x295   : > { %790 = vmatpush.msra.mxu0 %v748_v25 }
 0x296   : > { %1041 = vmatpush.msra.mxu2 %v748_v25 }
 0x297   : > { %791 = vmatpush.msra.mxu0 %v747_v26 }
 0x298   : > { %1042 = vmatpush.msra.mxu2 %v747_v26  ;;  %792 = vmatmul.f32.vlgmr.msra.gmra.mxu0 %v743_v27 }
 0x299   : > { %795 = vmatmul.f32.vlgmr.msra.gmra.mxu2 %v745_v28 }
 0x2ff   : > { %v816_v29 = vpop.f32.mrf.mxu1 }
 0x307   : > { %v819_v35 = vpop.f32.mrf.mxu1 }
 0x315   : > { %v793_v31 = vpop.f32.mrf.mxu0 }
 0x316   : > { %v794_v32 = vadd.f32 %v1163_v30, %v793_v31 }
 0x318   : > { %v817_v33 = vadd.f32 %v816_v29, %v794_v32 }
 0x31a   : > { %822 = vst [vmem:[%s1539_s3] sm:$0xff] %v817_v33 }
 0x31c   : > { %v796_v34 = vpop.f32.mrf.mxu2 }
 0x31d   : > { %v797_v36 = vadd.f32 %v1163_v30, %v796_v34 }
 0x31f   : > { %v820_v37 = vadd.f32 %v819_v35, %v797_v36 }
 0x321   : > { %823 = vst [vmem:[%s1539_s3 + $0x8] sm:$0xff] %v820_v37 }
 0x322 PF: > { %s832_s14 = smul.u32 %s1334_s27, %s1338_s28  ;;  %s838_s10 = sshll.u32 %s1539_s3, 4  ;;  %s839_s10 = int_to_ptr.vmem [resolvable:$true] %s838_s10 }
 0x323   : > { %s1716_s17 = sld [smem:[#allocation25_spill]]  ;;  %s825_s15 = scalar_lea.sflag [#allocation7], %s301_s1 }
 0x324   : > { %s988_s8 = sshll.u32 %s832_s14, 4 }
 0x329   : > { %s837_s19 = scalar_lea.hbm %s1716_s17, %s988_s8  ;;  %s1244_s28 = scalar_lea.hbm %s1716_s17, 48 }
 0x32a   : > { %s840_s24 = sshll.u32 %s837_s19, 4  ;;  %s841_s24 = int_to_ptr.hbm [resolvable:$true] %s840_s24 }
 0x32b   : > { %s1238_s5 = sshra.s32 %s841_s24, 4  ;;  %s1239_s5 = int_to_ptr.hbm [resolvable:$true] %s1238_s5 }
 0x32c   : > { %s1240_s21 = scalar_lea.hbm %s1239_s5, 16  ;;  %p1245_p7 = scmp.lt.s32.totalorder %s1239_s5, %s1716_s17 }
 0x32d   : > { %p1241_p2 = scmp.ne.s32.totalorder %s1239_s5, %s1240_s21  ;;  %p1246_p8 = scmp.lt.s32.totalorder %s1244_s28, %s1240_s21 }
 0x32f   : > { %p1242_p3 = pnand %p1241_p2, %p1464_p6  ;;  %p1247_p9 = por %p1246_p8, %p1245_p7 }
 0x331   : > { %p1243_p5 = pneg %p1242_p3 }
 0x333   : > { %p1248_p12 = pnand %p1247_p9, %p1243_p5 }
 0x335   : > { %1251 = shalt.err (!%p1248_p12)
}
 0x336   : > { %s1357_s1 = smov 128   ;;  %s1358_s4 = smov 8  }
 0x337   : > { %1049 = dma.vmem_to_hbm [thread:$0]  (%p1464_p6), %s839_s10, 256, %s841_s24, %s825_s15, %s1357_s1, %s1357_s1, %s1358_s4  }
 0x338 PF: > { %s1717_s6 = sld [smem:[#allocation14_spill]]  ;;  %p1066_p13 = scmp.ge.s32.totalorder %s1350_s7, 2 }
 0x33a   : > { %p1060_p11 = pnand %p1066_p13, %p1470_p10 }
 0x33c   : > { %p1061_p0 = pneg %p1060_p11 }
 0x33e   : > { %s855_s8 = sand.u32 1, %s1717_s6  }
 0x33f   : > { %s856_s9 = scalar_lea.sflag [#allocation7], %s855_s8 }
 0x340   : > { %1305 = dma.done.wait (%p1061_p0), %s856_s9, 256  }
 0x341   : > { %1307 = vsyncadd (%p1061_p0), %s856_s9, 4294967040  ;;  %s23_s7 = sadd.s32 1, %s1350_s7   ;;  %s1719_s28 = sld [smem:[#allocation15_spill]] }
 0x342   : > { %p20_p1 = scmp.ge.s32.totalorder %s23_s7, 8   ;;  %s1720_s13 = sld [smem:[#allocation18_spill]] }
 0x343   : > { %s1721_s10 = sld [smem:[#allocation19_spill]]  ;;  %s1722_s21 = smov %s1314_s22 }
 0x344   : > { %s1723_s22 = smov %s1318_s23  ;;  %s1724_s23 = smov %s1517_s30 }
 0x345   : > { %s1725_s24 = smov %s1326_s25  ;;  %s1726_s25 = smov %s1330_s26 }
 0x346   : > { %s1727_s26 = smov %s1506_s20  ;;  %s1728_s27 = smov %s1342_s29 }
 0x347   :  { %22 = sbr.rel (!%p20_p1) target bundleno = 17 (0x11), region = 114 }
 0x348   : > { %s1729_s29 = smov %s1720_s13 }
 0x349   : > { %s1730_s30 = smov %s1721_s10 }
 0x34c   :  { %862 = vsyncpa [#allocation6], 1 }
 0x34d   :  { %864 = vsyncpa [#allocation6 + $0x1], 1 }
 0x34e   :  { %865 = vsyncpa [#allocation9], 1 }
 0x34f   :  { %866 = vsyncpa [#allocation7], 1 }
 0x350   :  { %868 = vsyncpa [#allocation7 + $0x1], 1 }

</bundles_post_ra>
